<compile_context>
chip_gen: v7x
topology: tpu7x:2x2x1
jax: 0.10.0
libtpu: 0.0.40
codegen_flags: <defaults>
</compile_context>

<pallas_src>
import jax
import jax.numpy as jnp
from jax import lax
from jax.experimental import pallas as pl
from jax.experimental.pallas import tpu as pltpu

SELU_ALPHA = 1.6732632423543772
SELU_SCALE = 1.0507009873554805


def _selu(x):
    return SELU_SCALE * jnp.where(x > 0, x, SELU_ALPHA * (jnp.exp(x) - 1.0))


def _scm_kernel(x2d_ref,            # (T*B, D_in) bf16, time-major, row = t*B + b
                wih_ref,            # (D_in, 4H)  bf16  = W_ih^T (gate order i,f,g,o)
                whh_ref,            # (H, 4H)     bf16  = W_hh^T
                b_ref,              # (1, 4H)     f32   = b_ih + b_hh
                gmul_ref,           # (1, 4H)     f32   [0.5,0.5,1.0,0.5] per gate group
                gadd_ref,           # (1, 4H)     f32   [0.5,0.5,0.0,0.5] per gate group
                w_top_ref,          # (H, 3K)     f32   head rows for h_t0
                w_bot_ref,          # (H, 3K)     f32   head rows for h_tlast
                bhead_ref,          # (1, 3K)     f32   [b_shapeg, b_scaleg, 0]
                addp_ref,           # (1, 3K)     f32   [shape_param, scale_param, 0]
                selm_ref,           # (1, 3K)     f32   1.0 on SELU cols, 0.0 on gate cols
                out_ref):           # (B, 3K)     f32   [shape | scale | gate/temp]
    B = out_ref.shape[0]
    T = x2d_ref.shape[0] // B
    H = whh_ref.shape[0]

    # Hoisted per-lane activation constants (broadcast once, reused every step).
    gmul = jnp.broadcast_to(gmul_ref[...], (B, 4 * H))
    gadd = jnp.broadcast_to(gadd_ref[...], (B, 4 * H))
    whh = whh_ref[...]                                   # (H, 4H) bf16, hoisted

    # ---- Hoisted input projection: one bf16 matmul for all timesteps, kept in
    #      vregs ((T*B, 4H) is tiny) and sliced statically below.
    xw = (jnp.dot(x2d_ref[...], wih_ref[...],
                  preferred_element_type=jnp.float32) + b_ref[...])

    def activate(gates):
        # Single EUP tanh over the whole (B, 4H) tile:
        #   i/f/o lanes: sigmoid(x) = 0.5*tanh(0.5*x) + 0.5 ; g lanes: tanh(x).
        t = jnp.tanh(gates * gmul)
        return t * gmul + gadd

    # ---- t = 0: h == c == 0 -> no recurrent dot, no f*c term.
    a0 = activate(xw[0:B, :])
    c = a0[:, 0:H] * a0[:, 2 * H:3 * H]                  # c0 = i0 * g0
    h = a0[:, 3 * H:4 * H] * jnp.tanh(c)                 # h0 = o0 * tanh(c0)
    h0 = h                                               # feeds xrep[:, 0, :]

    # ---- Remaining timesteps, fully unrolled (T static & small); h/c live in
    #      vregs, only the bf16 h @ W_hh dot sits on the per-step chain.
    for t in range(1, T):
        gates = xw[t * B:(t + 1) * B, :] + jnp.dot(
            h.astype(jnp.bfloat16), whh, preferred_element_type=jnp.float32)
        a = activate(gates)
        c = a[:, H:2 * H] * c + a[:, 0:H] * a[:, 2 * H:3 * H]
        h = a[:, 3 * H:4 * H] * jnp.tanh(c)

    # ---- Epilogue (runs once, f32): relu6 halves feed pre-split head weights
    #      (no lane concat of [h0, h_last]); three K-wide heads fused into one
    #      (B, 3K) result; 1/temp already folded into the gate weight columns.
    x_top = jnp.clip(h0, 0.0, 6.0)
    x_bot = jnp.clip(h, 0.0, 6.0)
    lin = (jnp.dot(x_top, w_top_ref[...], preferred_element_type=jnp.float32)
           + jnp.dot(x_bot, w_bot_ref[...], preferred_element_type=jnp.float32)
           + bhead_ref[...])                             # (B, 3K)
    selu_lin = _selu(lin) + addp_ref[...]                # valid for shape/scale cols
    m = selm_ref[...]
    out_ref[...] = lin + m * (selu_lin - lin)            # gate cols: lin (== logits/temp)


def survival_clustering_forward(x, params, temp=1000.0):
    """x: (B, T, D_in) float32.  Returns (shape, scale, gate_logits/temp), each (B, k)."""
    B, T, D_in = x.shape
    H = params["w_hh"].shape[1]          # w_hh: (4H, H), PyTorch layout
    K = params["shape"].shape[0]

    # Time-major flattened activations: row t*B + b == x[b, t, :].
    x2d = (jnp.transpose(x, (1, 0, 2)).reshape(T * B, D_in)
           .astype(jnp.bfloat16))
    wih_t = params["w_ih"].T.astype(jnp.bfloat16)                 # (D_in, 4H)
    whh_t = params["w_hh"].T.astype(jnp.bfloat16)                 # (H, 4H)
    b = (params["b_ih"] + params["b_hh"]).reshape(1, 4 * H).astype(jnp.float32)

    # Fused-activation per-lane constants over the i,f,g,o lane groups.
    gmul = jnp.concatenate([jnp.full((H,), 0.5), jnp.full((H,), 0.5),
                            jnp.ones((H,)), jnp.full((H,), 0.5)]
                           ).reshape(1, 4 * H).astype(jnp.float32)
    gadd = jnp.concatenate([jnp.full((H,), 0.5), jnp.full((H,), 0.5),
                            jnp.zeros((H,)), jnp.full((H,), 0.5)]
                           ).reshape(1, 4 * H).astype(jnp.float32)

    # Fused head weights (shape|scale|gate), 1/temp folded into the gate cols,
    # split into the h0 / h_last halves (avoids the in-kernel lane concat).
    w_all = jnp.concatenate([params["w_shapeg"].T,
                             params["w_scaleg"].T,
                             params["w_gate"].T / float(temp)], axis=1)  # (2H, 3K)
    w_top = w_all[:H, :].astype(jnp.float32)
    w_bot = w_all[H:, :].astype(jnp.float32)
    zeros_k = jnp.zeros((K,), jnp.float32)
    bhead = jnp.concatenate([params["b_shapeg"], params["b_scaleg"],
                             zeros_k]).reshape(1, 3 * K).astype(jnp.float32)
    addp = jnp.concatenate([params["shape"], params["scale"],
                            zeros_k]).reshape(1, 3 * K).astype(jnp.float32)
    selm = jnp.concatenate([jnp.ones((2 * K,), jnp.float32),
                            zeros_k]).reshape(1, 3 * K)

    vmem = pl.BlockSpec(memory_space=pltpu.MemorySpace.VMEM)
    out = pl.pallas_call(
        _scm_kernel,
        out_shape=jax.ShapeDtypeStruct((B, 3 * K), jnp.float32),
        in_specs=[vmem] * 11,
        out_specs=vmem,
    )(x2d, wih_t, whh_t, b, gmul, gadd, w_top, w_bot, bhead, addp, selm)

    return out[:, :K], out[:, K:2 * K], out[:, 2 * K:]


def _reference_forward(x, params, temp):
    """Pure-JAX reference mirroring the PyTorch module (for correctness check)."""
    H = params["w_hh"].shape[1]
    hi = jax.lax.Precision.HIGHEST

    def cell(carry, x_t):
        h, c = carry
        gates = (jnp.dot(x_t, params["w_ih"].T, precision=hi)
                 + jnp.dot(h, params["w_hh"].T, precision=hi)
                 + params["b_ih"] + params["b_hh"])
        i = jax.nn.sigmoid(gates[:, 0:H])
        f = jax.nn.sigmoid(gates[:, H:2 * H])
        g = jnp.tanh(gates[:, 2 * H:3 * H])
        o = jax.nn.sigmoid(gates[:, 3 * H:4 * H])
        c = f * c + i * g
        h = o * jnp.tanh(c)
        return (h, c), h

    B = x.shape[0]
    h0 = jnp.zeros((B, H), jnp.float32)
    c0 = jnp.zeros((B, H), jnp.float32)
    _, hs = lax.scan(cell, (h0, c0), jnp.transpose(x, (1, 0, 2)))   # (T, B, H)
    xrep = jnp.concatenate([hs[0], hs[-1]], axis=1)
    xrep = jnp.clip(xrep, 0.0, 6.0)

    sh = _selu(jnp.dot(xrep, params["w_shapeg"].T, precision=hi)
               + params["b_shapeg"]) + params["shape"]
    sc = _selu(jnp.dot(xrep, params["w_scaleg"].T, precision=hi)
               + params["b_scaleg"]) + params["scale"]
    gt = jnp.dot(xrep, params["w_gate"].T, precision=hi) / temp
    return sh, sc, gt


if __name__ == "__main__":
    # small shapes consistent with the module: x is (batch, seq, inputdim)
    B, T, D_in, H, K = 2, 8, 4, 32, 4
    TEMP = 1000.0

    key = jax.random.PRNGKey(0)
    ks = jax.random.split(key, 12)
    bound = 1.0 / jnp.sqrt(jnp.float32(H))

    def u(k, shape):
        return jax.random.uniform(k, shape, jnp.float32, -bound, bound)

    params = {
        # LSTM (1 layer, gate order i, f, g, o like PyTorch)
        "w_ih": u(ks[0], (4 * H, D_in)),
        "w_hh": u(ks[1], (4 * H, H)),
        "b_ih": u(ks[2], (4 * H,)),
        "b_hh": u(ks[3], (4 * H,)),
        # heads: Linear(2H -> K)
        "w_shapeg": u(ks[4], (K, 2 * H)),
        "b_shapeg": u(ks[5], (K,)),
        "w_scaleg": u(ks[6], (K, 2 * H)),
        "b_scaleg": u(ks[7], (K,)),
        "w_gate": u(ks[8], (K, 2 * H)),
        # shape / scale parameters: -ones(k) as in __init__
        "shape": -jnp.ones((K,), jnp.float32),
        "scale": -jnp.ones((K,), jnp.float32),
    }

    x = jax.random.normal(ks[9], (B, T, D_in), jnp.float32)

    shape_o, scale_o, gate_o = survival_clustering_forward(x, params, temp=TEMP)
    jax.block_until_ready((shape_o, scale_o, gate_o))

    # correctness check against pure-JAX reference
    shape_r, scale_r, gate_r = _reference_forward(x, params, TEMP)
    assert jnp.allclose(shape_o, shape_r, rtol=5e-3, atol=5e-3)
    assert jnp.allclose(scale_o, scale_r, rtol=5e-3, atol=5e-3)
    assert jnp.allclose(gate_o, gate_r, rtol=5e-3, atol=5e-3)

    print("KERNEL_OK")
</pallas_src>

<mosaic_0001>
module attributes {stable_mosaic.version = 11 : i64} {
  func.func @_scm_kernel(%arg0: memref<16x4xbf16, #tpu.memory_space<vmem>>, %arg1: memref<4x128xbf16, #tpu.memory_space<vmem>>, %arg2: memref<32x128xbf16, #tpu.memory_space<vmem>>, %arg3: memref<1x128xf32, #tpu.memory_space<vmem>>, %arg4: memref<1x128xf32, #tpu.memory_space<vmem>>, %arg5: memref<1x128xf32, #tpu.memory_space<vmem>>, %arg6: memref<32x12xf32, #tpu.memory_space<vmem>>, %arg7: memref<32x12xf32, #tpu.memory_space<vmem>>, %arg8: memref<1x12xf32, #tpu.memory_space<vmem>>, %arg9: memref<1x12xf32, #tpu.memory_space<vmem>>, %arg10: memref<1x12xf32, #tpu.memory_space<vmem>>, %arg11: memref<2x12xf32, #tpu.memory_space<vmem>>) attributes {dimension_semantics = [], scalar_prefetch = 0 : i64, scratch_operands = 0 : i64, tpu.core_type = #tpu.core_type<tc>} {
    %c0 = arith.constant 0 : index
    %c0_0 = arith.constant 0 : index
    %0 = vector.load %arg4[%c0, %c0_0] : memref<1x128xf32, #tpu.memory_space<vmem>>, vector<1x128xf32>
    %1 = vector.shape_cast %0 : vector<1x128xf32> to vector<1x128xf32>
    %2 = vector.broadcast %1 : vector<1x128xf32> to vector<2x128xf32>
    %c0_1 = arith.constant 0 : index
    %c0_2 = arith.constant 0 : index
    %3 = vector.load %arg5[%c0_1, %c0_2] : memref<1x128xf32, #tpu.memory_space<vmem>>, vector<1x128xf32>
    %4 = vector.shape_cast %3 : vector<1x128xf32> to vector<1x128xf32>
    %5 = vector.broadcast %4 : vector<1x128xf32> to vector<2x128xf32>
    %c0_3 = arith.constant 0 : index
    %c0_4 = arith.constant 0 : index
    %6 = vector.load %arg2[%c0_3, %c0_4] : memref<32x128xbf16, #tpu.memory_space<vmem>>, vector<32x128xbf16>
    %c0_5 = arith.constant 0 : index
    %c0_6 = arith.constant 0 : index
    %7 = vector.load %arg0[%c0_5, %c0_6] : memref<16x4xbf16, #tpu.memory_space<vmem>>, vector<16x4xbf16>
    %c0_7 = arith.constant 0 : index
    %c0_8 = arith.constant 0 : index
    %8 = vector.load %arg1[%c0_7, %c0_8] : memref<4x128xbf16, #tpu.memory_space<vmem>>, vector<4x128xbf16>
    %cst = arith.constant dense<0.000000e+00> : vector<16x128xf32>
    %9 = tpu.matmul %7, %8, %cst {dimension_numbers = #tpu.dot_dimension_numbers<[1], [0], [0], [1], [0, 0, 1, 1], [], []>} : vector<16x4xbf16>, vector<4x128xbf16>, vector<16x128xf32> -> vector<16x128xf32>
    %c0_9 = arith.constant 0 : index
    %c0_10 = arith.constant 0 : index
    %10 = vector.load %arg3[%c0_9, %c0_10] : memref<1x128xf32, #tpu.memory_space<vmem>>, vector<1x128xf32>
    %11 = vector.broadcast %10 : vector<1x128xf32> to vector<16x128xf32>
    %12 = arith.addf %9, %11 : vector<16x128xf32>
    %13 = vector.extract_strided_slice %12 {offsets = [0, 0], sizes = [2, 128], strides = [1, 1]} : vector<16x128xf32> to vector<2x128xf32>
    %14 = arith.mulf %13, %2 : vector<2x128xf32>
    %15 = math.tanh %14 : vector<2x128xf32>
    %16 = arith.mulf %15, %2 : vector<2x128xf32>
    %17 = arith.addf %16, %5 : vector<2x128xf32>
    %18 = vector.extract_strided_slice %17 {offsets = [0, 0], sizes = [2, 32], strides = [1, 1]} : vector<2x128xf32> to vector<2x32xf32>
    %19 = vector.extract_strided_slice %17 {offsets = [0, 64], sizes = [2, 32], strides = [1, 1]} : vector<2x128xf32> to vector<2x32xf32>
    %20 = arith.mulf %18, %19 : vector<2x32xf32>
    %21 = vector.extract_strided_slice %17 {offsets = [0, 96], sizes = [2, 32], strides = [1, 1]} : vector<2x128xf32> to vector<2x32xf32>
    %22 = math.tanh %20 : vector<2x32xf32>
    %23 = arith.mulf %21, %22 : vector<2x32xf32>
    %24 = vector.extract_strided_slice %12 {offsets = [2, 0], sizes = [2, 128], strides = [1, 1]} : vector<16x128xf32> to vector<2x128xf32>
    %25 = arith.truncf %23 : vector<2x32xf32> to vector<2x32xbf16>
    %cst_11 = arith.constant dense<0.000000e+00> : vector<2x128xf32>
    %26 = tpu.matmul %25, %6, %cst_11 {dimension_numbers = #tpu.dot_dimension_numbers<[1], [0], [0], [1], [0, 0, 1, 1], [], []>} : vector<2x32xbf16>, vector<32x128xbf16>, vector<2x128xf32> -> vector<2x128xf32>
    %27 = arith.addf %24, %26 : vector<2x128xf32>
    %28 = arith.mulf %27, %2 : vector<2x128xf32>
    %29 = math.tanh %28 : vector<2x128xf32>
    %30 = arith.mulf %29, %2 : vector<2x128xf32>
    %31 = arith.addf %30, %5 : vector<2x128xf32>
    %32 = vector.extract_strided_slice %31 {offsets = [0, 32], sizes = [2, 32], strides = [1, 1]} : vector<2x128xf32> to vector<2x32xf32>
    %33 = arith.mulf %32, %20 : vector<2x32xf32>
    %34 = vector.extract_strided_slice %31 {offsets = [0, 0], sizes = [2, 32], strides = [1, 1]} : vector<2x128xf32> to vector<2x32xf32>
    %35 = vector.extract_strided_slice %31 {offsets = [0, 64], sizes = [2, 32], strides = [1, 1]} : vector<2x128xf32> to vector<2x32xf32>
    %36 = arith.mulf %34, %35 : vector<2x32xf32>
    %37 = arith.addf %33, %36 : vector<2x32xf32>
    %38 = vector.extract_strided_slice %31 {offsets = [0, 96], sizes = [2, 32], strides = [1, 1]} : vector<2x128xf32> to vector<2x32xf32>
    %39 = math.tanh %37 : vector<2x32xf32>
    %40 = arith.mulf %38, %39 : vector<2x32xf32>
    %41 = vector.extract_strided_slice %12 {offsets = [4, 0], sizes = [2, 128], strides = [1, 1]} : vector<16x128xf32> to vector<2x128xf32>
    %42 = arith.truncf %40 : vector<2x32xf32> to vector<2x32xbf16>
    %cst_12 = arith.constant dense<0.000000e+00> : vector<2x128xf32>
    %43 = tpu.matmul %42, %6, %cst_12 {dimension_numbers = #tpu.dot_dimension_numbers<[1], [0], [0], [1], [0, 0, 1, 1], [], []>} : vector<2x32xbf16>, vector<32x128xbf16>, vector<2x128xf32> -> vector<2x128xf32>
    %44 = arith.addf %41, %43 : vector<2x128xf32>
    %45 = arith.mulf %44, %2 : vector<2x128xf32>
    %46 = math.tanh %45 : vector<2x128xf32>
    %47 = arith.mulf %46, %2 : vector<2x128xf32>
    %48 = arith.addf %47, %5 : vector<2x128xf32>
    %49 = vector.extract_strided_slice %48 {offsets = [0, 32], sizes = [2, 32], strides = [1, 1]} : vector<2x128xf32> to vector<2x32xf32>
    %50 = arith.mulf %49, %37 : vector<2x32xf32>
    %51 = vector.extract_strided_slice %48 {offsets = [0, 0], sizes = [2, 32], strides = [1, 1]} : vector<2x128xf32> to vector<2x32xf32>
    %52 = vector.extract_strided_slice %48 {offsets = [0, 64], sizes = [2, 32], strides = [1, 1]} : vector<2x128xf32> to vector<2x32xf32>
    %53 = arith.mulf %51, %52 : vector<2x32xf32>
    %54 = arith.addf %50, %53 : vector<2x32xf32>
    %55 = vector.extract_strided_slice %48 {offsets = [0, 96], sizes = [2, 32], strides = [1, 1]} : vector<2x128xf32> to vector<2x32xf32>
    %56 = math.tanh %54 : vector<2x32xf32>
    %57 = arith.mulf %55, %56 : vector<2x32xf32>
    %58 = vector.extract_strided_slice %12 {offsets = [6, 0], sizes = [2, 128], strides = [1, 1]} : vector<16x128xf32> to vector<2x128xf32>
    %59 = arith.truncf %57 : vector<2x32xf32> to vector<2x32xbf16>
    %cst_13 = arith.constant dense<0.000000e+00> : vector<2x128xf32>
    %60 = tpu.matmul %59, %6, %cst_13 {dimension_numbers = #tpu.dot_dimension_numbers<[1], [0], [0], [1], [0, 0, 1, 1], [], []>} : vector<2x32xbf16>, vector<32x128xbf16>, vector<2x128xf32> -> vector<2x128xf32>
    %61 = arith.addf %58, %60 : vector<2x128xf32>
    %62 = arith.mulf %61, %2 : vector<2x128xf32>
    %63 = math.tanh %62 : vector<2x128xf32>
    %64 = arith.mulf %63, %2 : vector<2x128xf32>
    %65 = arith.addf %64, %5 : vector<2x128xf32>
    %66 = vector.extract_strided_slice %65 {offsets = [0, 32], sizes = [2, 32], strides = [1, 1]} : vector<2x128xf32> to vector<2x32xf32>
    %67 = arith.mulf %66, %54 : vector<2x32xf32>
    %68 = vector.extract_strided_slice %65 {offsets = [0, 0], sizes = [2, 32], strides = [1, 1]} : vector<2x128xf32> to vector<2x32xf32>
    %69 = vector.extract_strided_slice %65 {offsets = [0, 64], sizes = [2, 32], strides = [1, 1]} : vector<2x128xf32> to vector<2x32xf32>
    %70 = arith.mulf %68, %69 : vector<2x32xf32>
    %71 = arith.addf %67, %70 : vector<2x32xf32>
    %72 = vector.extract_strided_slice %65 {offsets = [0, 96], sizes = [2, 32], strides = [1, 1]} : vector<2x128xf32> to vector<2x32xf32>
    %73 = math.tanh %71 : vector<2x32xf32>
    %74 = arith.mulf %72, %73 : vector<2x32xf32>
    %75 = vector.extract_strided_slice %12 {offsets = [8, 0], sizes = [2, 128], strides = [1, 1]} : vector<16x128xf32> to vector<2x128xf32>
    %76 = arith.truncf %74 : vector<2x32xf32> to vector<2x32xbf16>
    %cst_14 = arith.constant dense<0.000000e+00> : vector<2x128xf32>
    %77 = tpu.matmul %76, %6, %cst_14 {dimension_numbers = #tpu.dot_dimension_numbers<[1], [0], [0], [1], [0, 0, 1, 1], [], []>} : vector<2x32xbf16>, vector<32x128xbf16>, vector<2x128xf32> -> vector<2x128xf32>
    %78 = arith.addf %75, %77 : vector<2x128xf32>
    %79 = arith.mulf %78, %2 : vector<2x128xf32>
    %80 = math.tanh %79 : vector<2x128xf32>
    %81 = arith.mulf %80, %2 : vector<2x128xf32>
    %82 = arith.addf %81, %5 : vector<2x128xf32>
    %83 = vector.extract_strided_slice %82 {offsets = [0, 32], sizes = [2, 32], strides = [1, 1]} : vector<2x128xf32> to vector<2x32xf32>
    %84 = arith.mulf %83, %71 : vector<2x32xf32>
    %85 = vector.extract_strided_slice %82 {offsets = [0, 0], sizes = [2, 32], strides = [1, 1]} : vector<2x128xf32> to vector<2x32xf32>
    %86 = vector.extract_strided_slice %82 {offsets = [0, 64], sizes = [2, 32], strides = [1, 1]} : vector<2x128xf32> to vector<2x32xf32>
    %87 = arith.mulf %85, %86 : vector<2x32xf32>
    %88 = arith.addf %84, %87 : vector<2x32xf32>
    %89 = vector.extract_strided_slice %82 {offsets = [0, 96], sizes = [2, 32], strides = [1, 1]} : vector<2x128xf32> to vector<2x32xf32>
    %90 = math.tanh %88 : vector<2x32xf32>
    %91 = arith.mulf %89, %90 : vector<2x32xf32>
    %92 = vector.extract_strided_slice %12 {offsets = [10, 0], sizes = [2, 128], strides = [1, 1]} : vector<16x128xf32> to vector<2x128xf32>
    %93 = arith.truncf %91 : vector<2x32xf32> to vector<2x32xbf16>
    %cst_15 = arith.constant dense<0.000000e+00> : vector<2x128xf32>
    %94 = tpu.matmul %93, %6, %cst_15 {dimension_numbers = #tpu.dot_dimension_numbers<[1], [0], [0], [1], [0, 0, 1, 1], [], []>} : vector<2x32xbf16>, vector<32x128xbf16>, vector<2x128xf32> -> vector<2x128xf32>
    %95 = arith.addf %92, %94 : vector<2x128xf32>
    %96 = arith.mulf %95, %2 : vector<2x128xf32>
    %97 = math.tanh %96 : vector<2x128xf32>
    %98 = arith.mulf %97, %2 : vector<2x128xf32>
    %99 = arith.addf %98, %5 : vector<2x128xf32>
    %100 = vector.extract_strided_slice %99 {offsets = [0, 32], sizes = [2, 32], strides = [1, 1]} : vector<2x128xf32> to vector<2x32xf32>
    %101 = arith.mulf %100, %88 : vector<2x32xf32>
    %102 = vector.extract_strided_slice %99 {offsets = [0, 0], sizes = [2, 32], strides = [1, 1]} : vector<2x128xf32> to vector<2x32xf32>
    %103 = vector.extract_strided_slice %99 {offsets = [0, 64], sizes = [2, 32], strides = [1, 1]} : vector<2x128xf32> to vector<2x32xf32>
    %104 = arith.mulf %102, %103 : vector<2x32xf32>
    %105 = arith.addf %101, %104 : vector<2x32xf32>
    %106 = vector.extract_strided_slice %99 {offsets = [0, 96], sizes = [2, 32], strides = [1, 1]} : vector<2x128xf32> to vector<2x32xf32>
    %107 = math.tanh %105 : vector<2x32xf32>
    %108 = arith.mulf %106, %107 : vector<2x32xf32>
    %109 = vector.extract_strided_slice %12 {offsets = [12, 0], sizes = [2, 128], strides = [1, 1]} : vector<16x128xf32> to vector<2x128xf32>
    %110 = arith.truncf %108 : vector<2x32xf32> to vector<2x32xbf16>
    %cst_16 = arith.constant dense<0.000000e+00> : vector<2x128xf32>
    %111 = tpu.matmul %110, %6, %cst_16 {dimension_numbers = #tpu.dot_dimension_numbers<[1], [0], [0], [1], [0, 0, 1, 1], [], []>} : vector<2x32xbf16>, vector<32x128xbf16>, vector<2x128xf32> -> vector<2x128xf32>
    %112 = arith.addf %109, %111 : vector<2x128xf32>
    %113 = arith.mulf %112, %2 : vector<2x128xf32>
    %114 = math.tanh %113 : vector<2x128xf32>
    %115 = arith.mulf %114, %2 : vector<2x128xf32>
    %116 = arith.addf %115, %5 : vector<2x128xf32>
    %117 = vector.extract_strided_slice %116 {offsets = [0, 32], sizes = [2, 32], strides = [1, 1]} : vector<2x128xf32> to vector<2x32xf32>
    %118 = arith.mulf %117, %105 : vector<2x32xf32>
    %119 = vector.extract_strided_slice %116 {offsets = [0, 0], sizes = [2, 32], strides = [1, 1]} : vector<2x128xf32> to vector<2x32xf32>
    %120 = vector.extract_strided_slice %116 {offsets = [0, 64], sizes = [2, 32], strides = [1, 1]} : vector<2x128xf32> to vector<2x32xf32>
    %121 = arith.mulf %119, %120 : vector<2x32xf32>
    %122 = arith.addf %118, %121 : vector<2x32xf32>
    %123 = vector.extract_strided_slice %116 {offsets = [0, 96], sizes = [2, 32], strides = [1, 1]} : vector<2x128xf32> to vector<2x32xf32>
    %124 = math.tanh %122 : vector<2x32xf32>
    %125 = arith.mulf %123, %124 : vector<2x32xf32>
    %126 = vector.extract_strided_slice %12 {offsets = [14, 0], sizes = [2, 128], strides = [1, 1]} : vector<16x128xf32> to vector<2x128xf32>
    %127 = arith.truncf %125 : vector<2x32xf32> to vector<2x32xbf16>
    %cst_17 = arith.constant dense<0.000000e+00> : vector<2x128xf32>
    %128 = tpu.matmul %127, %6, %cst_17 {dimension_numbers = #tpu.dot_dimension_numbers<[1], [0], [0], [1], [0, 0, 1, 1], [], []>} : vector<2x32xbf16>, vector<32x128xbf16>, vector<2x128xf32> -> vector<2x128xf32>
    %129 = arith.addf %126, %128 : vector<2x128xf32>
    %130 = arith.mulf %129, %2 : vector<2x128xf32>
    %131 = math.tanh %130 : vector<2x128xf32>
    %132 = arith.mulf %131, %2 : vector<2x128xf32>
    %133 = arith.addf %132, %5 : vector<2x128xf32>
    %134 = vector.extract_strided_slice %133 {offsets = [0, 32], sizes = [2, 32], strides = [1, 1]} : vector<2x128xf32> to vector<2x32xf32>
    %135 = arith.mulf %134, %122 : vector<2x32xf32>
    %136 = vector.extract_strided_slice %133 {offsets = [0, 0], sizes = [2, 32], strides = [1, 1]} : vector<2x128xf32> to vector<2x32xf32>
    %137 = vector.extract_strided_slice %133 {offsets = [0, 64], sizes = [2, 32], strides = [1, 1]} : vector<2x128xf32> to vector<2x32xf32>
    %138 = arith.mulf %136, %137 : vector<2x32xf32>
    %139 = arith.addf %135, %138 : vector<2x32xf32>
    %140 = vector.extract_strided_slice %133 {offsets = [0, 96], sizes = [2, 32], strides = [1, 1]} : vector<2x128xf32> to vector<2x32xf32>
    %141 = math.tanh %139 : vector<2x32xf32>
    %142 = arith.mulf %140, %141 : vector<2x32xf32>
    %cst_18 = arith.constant 0.000000e+00 : f32
    %cst_19 = arith.constant 6.000000e+00 : f32
    %143 = vector.broadcast %cst_18 : f32 to vector<2x32xf32>
    %144 = arith.maximumf %143, %23 : vector<2x32xf32>
    %145 = vector.broadcast %cst_19 : f32 to vector<2x32xf32>
    %146 = arith.minimumf %145, %144 : vector<2x32xf32>
    %cst_20 = arith.constant 0.000000e+00 : f32
    %cst_21 = arith.constant 6.000000e+00 : f32
    %147 = vector.broadcast %cst_20 : f32 to vector<2x32xf32>
    %148 = arith.maximumf %147, %142 : vector<2x32xf32>
    %149 = vector.broadcast %cst_21 : f32 to vector<2x32xf32>
    %150 = arith.minimumf %149, %148 : vector<2x32xf32>
    %c0_22 = arith.constant 0 : index
    %c0_23 = arith.constant 0 : index
    %151 = vector.load %arg6[%c0_22, %c0_23] : memref<32x12xf32, #tpu.memory_space<vmem>>, vector<32x12xf32>
    %cst_24 = arith.constant dense<0.000000e+00> : vector<2x12xf32>
    %152 = tpu.matmul %146, %151, %cst_24 {dimension_numbers = #tpu.dot_dimension_numbers<[1], [0], [0], [1], [0, 0, 1, 1], [], []>} : vector<2x32xf32>, vector<32x12xf32>, vector<2x12xf32> -> vector<2x12xf32>
    %c0_25 = arith.constant 0 : index
    %c0_26 = arith.constant 0 : index
    %153 = vector.load %arg7[%c0_25, %c0_26] : memref<32x12xf32, #tpu.memory_space<vmem>>, vector<32x12xf32>
    %cst_27 = arith.constant dense<0.000000e+00> : vector<2x12xf32>
    %154 = tpu.matmul %150, %153, %cst_27 {dimension_numbers = #tpu.dot_dimension_numbers<[1], [0], [0], [1], [0, 0, 1, 1], [], []>} : vector<2x32xf32>, vector<32x12xf32>, vector<2x12xf32> -> vector<2x12xf32>
    %155 = arith.addf %152, %154 : vector<2x12xf32>
    %c0_28 = arith.constant 0 : index
    %c0_29 = arith.constant 0 : index
    %156 = vector.load %arg8[%c0_28, %c0_29] : memref<1x12xf32, #tpu.memory_space<vmem>>, vector<1x12xf32>
    %157 = vector.broadcast %156 : vector<1x12xf32> to vector<2x12xf32>
    %158 = arith.addf %155, %157 : vector<2x12xf32>
    %cst_30 = arith.constant 0.000000e+00 : f32
    %159 = vector.broadcast %cst_30 : f32 to vector<2x12xf32>
    %160 = arith.cmpf ogt, %158, %159 : vector<2x12xf32>
    %161 = math.exp %158 : vector<2x12xf32>
    %cst_31 = arith.constant 1.000000e+00 : f32
    %162 = vector.broadcast %cst_31 : f32 to vector<2x12xf32>
    %163 = arith.subf %161, %162 : vector<2x12xf32>
    %cst_32 = arith.constant 1.67326319 : f32
    %164 = vector.broadcast %cst_32 : f32 to vector<2x12xf32>
    %165 = arith.mulf %164, %163 : vector<2x12xf32>
    %166 = arith.select %160, %158, %165 : vector<2x12xi1>, vector<2x12xf32>
    %cst_33 = arith.constant 1.05070102 : f32
    %167 = vector.broadcast %cst_33 : f32 to vector<2x12xf32>
    %168 = arith.mulf %167, %166 : vector<2x12xf32>
    %c0_34 = arith.constant 0 : index
    %c0_35 = arith.constant 0 : index
    %169 = vector.load %arg9[%c0_34, %c0_35] : memref<1x12xf32, #tpu.memory_space<vmem>>, vector<1x12xf32>
    %170 = vector.broadcast %169 : vector<1x12xf32> to vector<2x12xf32>
    %171 = arith.addf %168, %170 : vector<2x12xf32>
    %c0_36 = arith.constant 0 : index
    %c0_37 = arith.constant 0 : index
    %172 = vector.load %arg10[%c0_36, %c0_37] : memref<1x12xf32, #tpu.memory_space<vmem>>, vector<1x12xf32>
    %173 = arith.subf %171, %158 : vector<2x12xf32>
    %174 = vector.broadcast %172 : vector<1x12xf32> to vector<2x12xf32>
    %175 = arith.mulf %174, %173 : vector<2x12xf32>
    %176 = arith.addf %158, %175 : vector<2x12xf32>
    %c0_38 = arith.constant 0 : index
    %c0_39 = arith.constant 0 : index
    %177 = vector.load %arg11[%c0_38, %c0_39] : memref<2x12xf32, #tpu.memory_space<vmem>>, vector<2x12xf32>
    tpu.vector_store %arg11[%c0_38, %c0_39], %176 {strides = array<i32>} : memref<2x12xf32, #tpu.memory_space<vmem>>, vector<2x12xf32>,
    return
  }
}

</mosaic_0001>

<bundles_post_ra>
// kernel: tpu_custom_call.1
= control target key start
LH: loop header
LB: loop body
LE: loop exit
PB: predicated region body
PF: predicated region fallthrough
CT: control target
= control target key end

     0   :  { %vm77_vm0 = vcmask 1041408   ;;  %v1108_v1 = vmov 0.0   ;;  %vm1109_vm1 = vmmov 0   ;;  %vm73_vm2 = vcmask 31744   ;;  %s1380_s0 = inlined_call_operand.vmem [shape: bf16[16,4], index: 0, kind: input, shape index: {}]   ;;  %s1381_s1 = inlined_call_operand.vmem [shape: bf16[4,128], index: 1, kind: input, shape index: {}]   ;;  %s1382_s2 = inlined_call_operand.vmem [shape: bf16[32,128], index: 2, kind: input, shape index: {}]   ;;  %s1383_s3 = inlined_call_operand.vmem [shape: f32[1,128], index: 3, kind: input, shape index: {}]   ;;  %s1384_s4 = inlined_call_operand.vmem [shape: f32[1,128], index: 4, kind: input, shape index: {}]   ;;  %s1385_s5 = inlined_call_operand.vmem [shape: f32[1,128], index: 5, kind: input, shape index: {}]   ;;  %s1386_s6 = inlined_call_operand.vmem [shape: f32[32,12], index: 6, kind: input, shape index: {}]   ;;  %s1387_s7 = inlined_call_operand.vmem [shape: f32[32,12], index: 7, kind: input, shape index: {}]   ;;  %s1388_s8 = inlined_call_operand.vmem [shape: f32[1,12], index: 8, kind: input, shape index: {}]   ;;  %s1389_s9 = inlined_call_operand.vmem [shape: f32[1,12], index: 9, kind: input, shape index: {}]   ;;  %s1390_s10 = inlined_call_operand.vmem [shape: f32[1,12], index: 10, kind: input, shape index: {}]   ;;  %s1391_s11 = inlined_call_operand.hbm [shape: f32[2,12], index: 11, kind: output, shape index: {}]  }
   0x1   :  { %v60_v0 = vld [vmem:[%s1381_s1] sm:$0x3]  ;;  %944 = vmatprep.subr.bf16.mxu0 %v1108_v1  ;;  %946 = vmatprep.mubr.msk.bf16.mxu0 %vm1109_vm1, %v1108_v1 }
   0x2   :  { %v79_v2 = vsel %vm77_vm0, %v60_v0, 0  ;;  %v1047_v3 = vld [vmem:[%s1380_s0] sm:$0xff]   ;;  %950 = vmatprep.subr.bf16.mxu1 %v1108_v1  ;;  %954 = vmatprep.mubr.msk.bf16.mxu1 %vm1109_vm1, %v1108_v1 }
   0x3   :  { %945 = vmatpush3.bf16.msra.mxu0 %v79_v2 }
   0x4   :  { %958 = vmatprep.subr.bf16.mxu0 %v1108_v1 }
   0x5   :  { %16 = vsyncpa [#allocation3], 0  ;;  %v893_v4 = vld [vmem:[%s1383_s3] ss:$0 sm:$0xff]  ;;  %v1221_v20 = vld [vmem:[%s1382_s2 + $0x8] sm:$0xff]   ;;  %s1111_s27 = smov 96  }
   0x6   :  { %947 = vmatmul.mubr.msk.bf16.vlgmr.msra.gmra.mrb[0].mxu0 %vm73_vm2, %v1047_v3  ;;  %v1196_v5 = vld [vmem:[%s1384_s4] ss:$0 sm:$0xff]  ;;  %s1110_s4 = smov 64   ;;  %vm153_vm3 = vcmask 261120   ;;  %vm875_vm5 = vcmask 91136  }
   0x7   :  { %962 = vmatprep.mubr.msk.bf16.mxu0 %vm1109_vm1, %v1108_v1  ;;  %v1207_v14 = vld [vmem:[%s1385_s5] ss:$0 sm:$0xff] }
   0x8   :  { %v1215_v19 = vld [vmem:[%s1382_s2] sm:$0xff]   ;;  %s1112_s2 = smov 32  }
   0x9   :  { %951 = vmatpush3.bf16.msra.mxu1 %v1215_v19  ;;  %959 = vmatpush3.bf16.msra.mxu0 %v1215_v19 }
   0xa   :  { %952 = vmatprep.subr.bf16.mxu1 %v1108_v1  ;;  %960 = vmatprep.subr.bf16.mxu0 %v1108_v1 }
   0xd   :  { %953 = vmatpush3.bf16.msra.mxu1 %v1221_v20  ;;  %961 = vmatpush3.bf16.msra.mxu0 %v1221_v20 }
   0xe   :  { %966 = vmatprep.subr.bf16.mxu1 %v1108_v1  ;;  %974 = vmatprep.subr.bf16.mxu0 %v1108_v1 }
  0xd9   :  { %v115_v6 = vpop.f32.mrb[0].mxu0 }
  0xda   :  { %v1198_v7 = vadd.f32 %v893_v4, %v115_v6  ;;  %v948_v8 = vpop.f32.mrb[1].mxu0 }
  0xdb   :  { %v118_v9 = vpop.f32.mrb[2].mxu0 }
  0xdc   :  { %v122_v10 = vmul.f32 %v1196_v5, %v1198_v7  ;;  %v1202_v11 = vadd.f32 %v893_v4, %v118_v9  ;;  %v949_v12 = vpop.f32.mrb[3].mxu0 }
  0xde   :  { %1050 = vtanh.f32 %v122_v10 }
  0xe8   :  { %v1051_v13 = vpop.eup %1050 }
  0xe9   :  { %v124_v15 = vmul.f32 %v1051_v13, %v1196_v5 }
  0xeb   :  { %v125_v16 = vadd.f32 %v1207_v14, %v124_v15 }
  0xed   :  { %127 = vrot.lane.b32.xlu0 %v125_v16, %s1110_s4 }
 0x15f   :  { %v128_v17 = vpop.permute.xlu0 %127 }
 0x160   :  { %v130_v18 = vmul.f32 %v128_v17, %v125_v16 }
 0x162   :  { %1052 = vtanh.f32 %v130_v18  ;;  %v206_v22 = vrot.slane %v130_v18, 6 }
 0x16c   :  { %v1053_v21 = vpop.eup %1052 }
 0x16d   :  { %133 = vrot.lane.b32.xlu0 %v1053_v21, %s1111_s27 }
 0x171   :  { %207 = vrot.lane.b32.xlu0 %v206_v22, %s1112_s2 }
 0x1df   :  { %v134_v23 = vpop.permute.xlu0 %133 }
 0x1e0   :  { %v1231_v24 = vmul.f32 %v134_v23, %v125_v16 }
 0x1e2   :  { %v137_v25 = vpack.c.bf16 %v1231_v24, %v1231_v24 }
 0x1e3   :  { %v208_v39 = vpop.permute.xlu0 %207 }
 0x1e4   :  { %139 = vrot.lane.b32.xlu1 %v137_v25, %s1112_s2 }
 0x256   :  { %v140_v26 = vpop.permute.xlu1 %139 }
 0x257   :  { %955 = vmatmul.mubr.msk.bf16.vlgmr.msra.gmra.mrb[0].mxu1 %vm153_vm3, %v140_v26 }
 0x258   :  { %967 = vmatpush3.bf16.msra.mxu1 %v1215_v19  ;;  %970 = vmatprep.mubr.msk.bf16.mxu1 %vm1109_vm1, %v1108_v1 }
 0x259   :  { %968 = vmatprep.subr.bf16.mxu1 %v1108_v1 }
 0x25c   :  { %969 = vmatpush3.bf16.msra.mxu1 %v1221_v20 }
 0x25d   :  { %982 = vmatprep.subr.bf16.mxu1 %v1108_v1 }
 0x32a   :  { %v191_v27 = vpop.f32.mrb[0].mxu1 }
 0x32b   :  { %v198_v28 = vrot.slane %v191_v27, 6  ;;  %v956_v29 = vpop.f32.mrb[1].mxu1 }
 0x32c   :  { %v194_v30 = vpop.f32.mrb[2].mxu1 }
 0x32d   :  { %v200_v31 = vadd.f32 %v198_v28, %v1198_v7  ;;  %v957_v32 = vpop.f32.mrb[3].mxu1 }
 0x32f   :  { %v201_v33 = vmul.f32 %v1196_v5, %v200_v31 }
 0x331   :  { %1054 = vtanh.f32 %v201_v33 }
 0x33b   :  { %v1055_v34 = vpop.eup %1054 }
 0x33c   :  { %v203_v35 = vmul.f32 %v1055_v34, %v1196_v5 }
 0x33e   :  { %v204_v36 = vadd.f32 %v1207_v14, %v203_v35 }
 0x340   :  { %212 = vrot.lane.b32.xlu1 %v204_v36, %s1110_s4  ;;  %v210_v40 = vmul.f32 %v208_v39, %v204_v36 }
 0x3b2   :  { %v213_v37 = vpop.permute.xlu1 %212 }
 0x3b3   :  { %v215_v38 = vmul.f32 %v213_v37, %v204_v36 }
 0x3b5   :  { %217 = vrot.lane.b32.xlu1 %v215_v38, %s1112_s2 }
 0x427   :  { %v218_v41 = vpop.permute.xlu1 %217 }
 0x428   :  { %v220_v42 = vadd.f32 %v218_v41, %v210_v40 }
 0x42a   :  { %1056 = vtanh.f32 %v220_v42  ;;  %v284_v61 = vrot.slane %v220_v42, 6 }
 0x434   :  { %v1057_v43 = vpop.eup %1056 }
 0x435   :  { %223 = vrot.lane.b32.xlu0 %v1057_v43, %s1110_s4 }
 0x4a7   :  { %v224_v44 = vpop.permute.xlu0 %223 }
 0x4a8   :  { %v226_v45 = vmul.f32 %v224_v44, %v204_v36 }
 0x4aa   :  { %v227_v46 = vpack.c.bf16 %v226_v45, %v226_v45 }
 0x4ac   :  { %v229_v47 = vrot.slane %v227_v46, 1 }
 0x4ae   :  { %230 = vrot.lane.b32.xlu1 %v229_v47, %s1112_s2 }
 0x520   :  { %v231_v48 = vpop.permute.xlu1 %230 }
 0x521   :  { %963 = vmatmul.mubr.msk.bf16.vlgmr.msra.gmra.mrb[4].mxu0 %vm153_vm3, %v231_v48 }
 0x522   :  { %975 = vmatpush3.bf16.msra.mxu0 %v1215_v19  ;;  %978 = vmatprep.mubr.msk.bf16.mxu0 %vm1109_vm1, %v1108_v1 }
 0x523   :  { %976 = vmatprep.subr.bf16.mxu0 %v1108_v1 }
 0x526   :  { %977 = vmatpush3.bf16.msra.mxu0 %v1221_v20 }
 0x527   :  { %990 = vmatprep.subr.bf16.mxu0 %v1108_v1 }
 0x5f4   :  { %v269_v49 = vpop.f32.mrb[4].mxu0 }
 0x5f5   :  { %v276_v50 = vrot.slane %v269_v49, 4  ;;  %v964_v51 = vpop.f32.mrb[5].mxu0 }
 0x5f6   :  { %v272_v52 = vpop.f32.mrb[6].mxu0 }
 0x5f7   :  { %v278_v53 = vadd.f32 %v276_v50, %v1198_v7  ;;  %v965_v54 = vpop.f32.mrb[7].mxu0 }
 0x5f9   :  { %v279_v55 = vmul.f32 %v1196_v5, %v278_v53 }
 0x5fb   :  { %1058 = vtanh.f32 %v279_v55 }
 0x605   :  { %v1059_v56 = vpop.eup %1058 }
 0x606   :  { %v281_v57 = vmul.f32 %v1059_v56, %v1196_v5 }
 0x608   :  { %v282_v58 = vadd.f32 %v1207_v14, %v281_v57 }
 0x60a   :  { %288 = vrot.lane.b32.xlu0 %v282_v58, %s1110_s4  ;;  %v286_v62 = vmul.f32 %v284_v61, %v282_v58 }
 0x67c   :  { %v289_v59 = vpop.permute.xlu0 %288 }
 0x67d   :  { %v291_v60 = vmul.f32 %v289_v59, %v282_v58 }
 0x67f   :  { %293 = vrot.lane.b32.xlu1 %v291_v60, %s1112_s2 }
 0x6f1   :  { %v294_v63 = vpop.permute.xlu1 %293 }
 0x6f2   :  { %v296_v0 = vadd.f32 %v294_v63, %v286_v62 }
 0x6f4   :  { %1060 = vtanh.f32 %v296_v0  ;;  %v360_v27 = vrot.slane %v296_v0, 6 }
 0x6fe   :  { %v1061_v2 = vpop.eup %1060 }
 0x6ff   :  { %299 = vrot.lane.b32.xlu0 %v1061_v2, %s1110_s4 }
 0x771   :  { %v300_v3 = vpop.permute.xlu0 %299 }
 0x772   :  { %v302_v4 = vmul.f32 %v300_v3, %v282_v58 }
 0x774   :  { %v303_v6 = vpack.c.bf16 %v302_v4, %v302_v4 }
 0x776   :  { %v305_v8 = vrot.slane %v303_v6, 2 }
 0x778   :  { %306 = vrot.lane.b32.xlu1 %v305_v8, %s1112_s2 }
 0x7ea   :  { %v307_v9 = vpop.permute.xlu1 %306 }
 0x7eb   :  { %971 = vmatmul.mubr.msk.bf16.vlgmr.msra.gmra.mrb[4].mxu1 %vm153_vm3, %v307_v9 }
 0x7ec   :  { %983 = vmatpush3.bf16.msra.mxu1 %v1215_v19  ;;  %986 = vmatprep.mubr.msk.bf16.mxu1 %vm1109_vm1, %v1108_v1 }
 0x7ed   :  { %984 = vmatprep.subr.bf16.mxu1 %v1108_v1 }
 0x7f0   :  { %985 = vmatpush3.bf16.msra.mxu1 %v1221_v20 }
 0x7f1   :  { %998 = vmatprep.subr.bf16.mxu1 %v1108_v1 }
 0x8be   :  { %v345_v10 = vpop.f32.mrb[4].mxu1 }
 0x8bf   :  { %v352_v12 = vrot.slane %v345_v10, 2  ;;  %v972_v13 = vpop.f32.mrb[5].mxu1 }
 0x8c0   :  { %v348_v15 = vpop.f32.mrb[6].mxu1 }
 0x8c1   :  { %v354_v16 = vadd.f32 %v352_v12, %v1198_v7  ;;  %v973_v17 = vpop.f32.mrb[7].mxu1 }
 0x8c3   :  { %v355_v18 = vmul.f32 %v1196_v5, %v354_v16 }
 0x8c5   :  { %1062 = vtanh.f32 %v355_v18 }
 0x8cf   :  { %v1063_v21 = vpop.eup %1062 }
 0x8d0   :  { %v357_v22 = vmul.f32 %v1063_v21, %v1196_v5 }
 0x8d2   :  { %v358_v23 = vadd.f32 %v1207_v14, %v357_v22 }
 0x8d4   :  { %364 = vrot.lane.b32.xlu0 %v358_v23, %s1110_s4  ;;  %v362_v28 = vmul.f32 %v360_v27, %v358_v23 }
 0x946   :  { %v365_v25 = vpop.permute.xlu0 %364 }
 0x947   :  { %v367_v26 = vmul.f32 %v365_v25, %v358_v23 }
 0x949   :  { %369 = vrot.lane.b32.xlu1 %v367_v26, %s1112_s2 }
 0x9bb   :  { %v370_v29 = vpop.permute.xlu1 %369 }
 0x9bc   :  { %v372_v30 = vadd.f32 %v370_v29, %v362_v28 }
 0x9be   :  { %1064 = vtanh.f32 %v372_v30  ;;  %v433_v47 = vrot.slane %v372_v30, 6 }
 0x9c8   :  { %v1065_v7 = vpop.eup %1064 }
 0x9c9   :  { %375 = vrot.lane.b32.xlu0 %v1065_v7, %s1110_s4 }
 0xa3b   :  { %v376_v31 = vpop.permute.xlu0 %375 }
 0xa3c   :  { %v378_v32 = vmul.f32 %v376_v31, %v358_v23 }
 0xa3e   :  { %v379_v33 = vpack.c.bf16 %v378_v32, %v378_v32 }
 0xa40   :  { %v381_v34 = vrot.slane %v379_v33, 3 }
 0xa42   :  { %382 = vrot.lane.b32.xlu1 %v381_v34, %s1112_s2 }
 0xab4   :  { %v383_v35 = vpop.permute.xlu1 %382 }
 0xab5   :  { %979 = vmatmul.mubr.msk.bf16.vlgmr.msra.gmra.mrb[8].mxu0 %vm153_vm3, %v383_v35 }
 0xab6   :  { %991 = vmatpush3.bf16.msra.mxu0 %v1215_v19  ;;  %994 = vmatprep.mubr.msk.bf16.mxu0 %vm1109_vm1, %v1108_v1 }
 0xab7   :  { %992 = vmatprep.subr.bf16.mxu0 %v1108_v1 }
 0xaba   :  { %993 = vmatpush3.bf16.msra.mxu0 %v1221_v20 }
 0xb88   :  { %v421_v36 = vpop.f32.mrb[8].mxu0 }
 0xb89   :  { %v427_v37 = vadd.f32 %v421_v36, %v1202_v11  ;;  %v980_v38 = vpop.f32.mrb[9].mxu0 }
 0xb8a   :  { %v424_v39 = vpop.f32.mrb[10].mxu0 }
 0xb8b   :  { %v428_v40 = vmul.f32 %v1196_v5, %v427_v37  ;;  %v981_v41 = vpop.f32.mrb[11].mxu0 }
 0xb8d   :  { %1066 = vtanh.f32 %v428_v40 }
 0xb97   :  { %v1067_v42 = vpop.eup %1066 }
 0xb98   :  { %v430_v43 = vmul.f32 %v1067_v42, %v1196_v5 }
 0xb9a   :  { %v431_v44 = vadd.f32 %v1207_v14, %v430_v43 }
 0xb9c   :  { %437 = vrot.lane.b32.xlu0 %v431_v44, %s1110_s4  ;;  %v435_v48 = vmul.f32 %v433_v47, %v431_v44 }
 0xc0e   :  { %v438_v45 = vpop.permute.xlu0 %437 }
 0xc0f   :  { %v440_v46 = vmul.f32 %v438_v45, %v431_v44 }
 0xc11   :  { %442 = vrot.lane.b32.xlu1 %v440_v46, %s1112_s2 }
 0xc83   :  { %v443_v49 = vpop.permute.xlu1 %442 }
 0xc84   :  { %v445_v50 = vadd.f32 %v443_v49, %v435_v48 }
 0xc86   :  { %1068 = vtanh.f32 %v445_v50 }
 0xc90   :  { %v1069_v51 = vpop.eup %1068 }
 0xc91   :  { %448 = vrot.lane.b32.xlu0 %v1069_v51, %s1110_s4 }
 0xd03   :  { %v449_v52 = vpop.permute.xlu0 %448 }
 0xd04   :  { %v451_v53 = vmul.f32 %v449_v52, %v431_v44 }
 0xd06   :  { %v452_v54 = vpack.c.bf16 %v451_v53, %v451_v53  ;;  %v1113_v53 = vmov 0.0|0.0  }
 0xd07   :  { %1028 = vmatprep.subr.bf16.mxu0 %v1113_v53 }
 0xd08   :  { %454 = vrot.lane.b32.xlu1 %v452_v54, %s1112_s2 }
 0xd7a   :  { %v455_v55 = vpop.permute.xlu1 %454 }
 0xd7b   :  { %987 = vmatmul.mubr.msk.bf16.vlgmr.msra.gmra.mrb[8].mxu1 %vm153_vm3, %v455_v55  ;;  %v685_v55 = vld [vmem:[%s1386_s6 + $0x10] sm:$0xff] }
 0xd7c   :  { %999 = vmatpush3.bf16.msra.mxu1 %v1215_v19  ;;  %1002 = vmatprep.mubr.msk.bf16.mxu1 %vm1109_vm1, %v1108_v1 }
 0xd7d   :  { %1000 = vmatprep.subr.bf16.mxu1 %v1108_v1 }
 0xd80   :  { %1001 = vmatpush3.bf16.msra.mxu1 %v1221_v20  ;;  %v508_v20 = vrot.slane %v445_v50, 6 }
 0xd81   :  { %1034 = vmatprep.subr.bf16.mxu1 %v1113_v53 }
 0xe4e   :  { %v493_v56 = vpop.f32.mrb[8].mxu1 }
 0xe4f   :  { %v500_v57 = vrot.slane %v493_v56, 6  ;;  %v988_v58 = vpop.f32.mrb[9].mxu1  ;;  %v686_v56 = vld [vmem:[%s1386_s6 + $0x18] sm:$0xff] }
 0xe50   :  { %v496_v59 = vpop.f32.mrb[10].mxu1  ;;  %v1038_v58 = vpack.c.bf16 %v686_v56, %v685_v55 }
 0xe51   :  { %v502_v60 = vadd.f32 %v500_v57, %v1202_v11  ;;  %v989_v61 = vpop.f32.mrb[11].mxu1 }
 0xe52   :  { %v688_v61 = vld [vmem:[%s1387_s7 + $0x8] sm:$0xff] }
 0xe53   :  { %v503_v62 = vmul.f32 %v1196_v5, %v502_v60  ;;  %v687_v60 = vld [vmem:[%s1387_s7] sm:$0xff] }
 0xe55   :  { %1070 = vtanh.f32 %v503_v62  ;;  %v689_v62 = vld [vmem:[%s1387_s7 + $0x10] sm:$0xff] }
 0xe5f   :  { %v1071_v63 = vpop.eup %1070 }
 0xe60   :  { %v505_v19 = vmul.f32 %v1071_v63, %v1196_v5  ;;  %v1029_v63 = vpack.c.bf16 %v688_v61, %v687_v60 }
 0xe62   :  { %v506_v0 = vadd.f32 %v1207_v14, %v505_v19  ;;  %v690_v19 = vld [vmem:[%s1387_s7 + $0x18] sm:$0xff] }
 0xe64   :  { %512 = vrot.lane.b32.xlu0 %v506_v0, %s1110_s4  ;;  %v510_v4 = vmul.f32 %v508_v20, %v506_v0 }
 0xed6   :  { %v513_v2 = vpop.permute.xlu0 %512 }
 0xed7   :  { %v515_v3 = vmul.f32 %v513_v2, %v506_v0  ;;  %v1032_v2 = vpack.c.bf16 %v690_v19, %v689_v62 }
 0xed9   :  { %517 = vrot.lane.b32.xlu1 %v515_v3, %s1112_s2 }
 0xf4b   :  { %v518_v6 = vpop.permute.xlu1 %517 }
 0xf4c   :  { %v520_v8 = vadd.f32 %v518_v6, %v510_v4 }
 0xf4e   :  { %1072 = vtanh.f32 %v520_v8  ;;  %v584_v31 = vrot.slane %v520_v8, 6 }
 0xf58   :  { %v1073_v9 = vpop.eup %1072 }
 0xf59   :  { %523 = vrot.lane.b32.xlu0 %v1073_v9, %s1110_s4 }
 0xfcb   :  { %v524_v10 = vpop.permute.xlu0 %523 }
 0xfcc   :  { %v526_v12 = vmul.f32 %v524_v10, %v506_v0  ;;  %v679_v0 = vmax.f32 %v1231_v24, 0.0 }
 0xfce   :  { %v527_v13 = vpack.c.bf16 %v526_v12, %v526_v12  ;;  %v680_v20 = vmin.f32 %v679_v0, 6.0 }
 0xfd0   :  { %v529_v15 = vrot.slane %v527_v13, 1 }
 0xfd2   :  { %530 = vrot.lane.b32.xlu1 %v529_v15, %s1112_s2 }
0x1044   :  { %v531_v16 = vpop.permute.xlu1 %530 }
0x1045   :  { %995 = vmatmul.mubr.msk.bf16.vlgmr.msra.gmra.mrb[12].mxu0 %vm153_vm3, %v531_v16 }
0x1046   :  { %1014 = vmatprep.mubr.msk.f32.mxu0 %vm1109_vm1, %v1108_v1  ;;  %1030 = vmatpush3.bf16.msra.mxu0 %v1029_v63 }
0x1047   :  { %1031 = vmatprep.subr.bf16.mxu0 %v1113_v53 }
0x104a   :  { %1033 = vmatpush3.bf16.msra.mxu0 %v1032_v2 }
0x1118   :  { %v569_v17 = vpop.f32.mrb[12].mxu0 }
0x1119   :  { %v576_v18 = vrot.slane %v569_v17, 4  ;;  %v996_v21 = vpop.f32.mrb[13].mxu0  ;;  %v907_v17 = vld [vmem:[%s1388_s8] ss:$0 sm:$0xff]  ;;  %s1114_s8 = smov [#allocation2]  }
0x111a   :  { %v572_v22 = vpop.f32.mrb[14].mxu0  ;;  %s883_s25 = sshll.u32 %s1114_s8, 4  ;;  %s884_s25 = int_to_ptr.vmem [resolvable:$true] %s883_s25 }
0x111b   :  { %v578_v23 = vadd.f32 %v576_v18, %v1202_v11  ;;  %v997_v25 = vpop.f32.mrb[15].mxu0  ;;  %s1084_s26 = scalar_lea.vmem %s884_s25, 32  ;;  %p1089_p1 = scmp.lt.s32.totalorder %s884_s25, %s884_s25 }
0x111c   :  { %p1085_p0 = scmp.ne.s32.totalorder %s884_s25, %s1084_s26  ;;  %p1090_p2 = scmp.lt.s32.totalorder %s1084_s26, %s1084_s26 }
0x111d   :  { %v579_v26 = vmul.f32 %v1196_v5, %v578_v23 }
0x111e   :  { %p1091_p3 = por %p1090_p2, %p1089_p1 }
0x111f   :  { %1074 = vtanh.f32 %v579_v26 }
0x1120   :  { %p1092_p4 = pnand %p1091_p3, %p1085_p0 }
0x1129   :  { %v1075_v27 = vpop.eup %1074 }
0x112a   :  { %v581_v28 = vmul.f32 %v1075_v27, %v1196_v5 }
0x112c   :  { %v582_v29 = vadd.f32 %v1207_v14, %v581_v28 }
0x112e   :  { %588 = vrot.lane.b32.xlu0 %v582_v29, %s1110_s4  ;;  %v586_v32 = vmul.f32 %v584_v31, %v582_v29  ;;  %v910_v31 = vld [vmem:[%s1390_s10] ss:$0 sm:$0xff] }
0x11a0   :  { %v589_v30 = vpop.permute.xlu0 %588 }
0x11a1   :  { %v591_v7 = vmul.f32 %v589_v30, %v582_v29 }
0x11a3   :  { %593 = vrot.lane.b32.xlu1 %v591_v7, %s1112_s2 }
0x1215   :  { %v594_v33 = vpop.permute.xlu1 %593 }
0x1216   :  { %v596_v34 = vadd.f32 %v594_v33, %v586_v32 }
0x1218   :  { %1076 = vtanh.f32 %v596_v34 }
0x1222   :  { %v1077_v35 = vpop.eup %1076 }
0x1223   :  { %599 = vrot.lane.b32.xlu0 %v1077_v35, %s1110_s4 }
0x1295   :  { %v600_v36 = vpop.permute.xlu0 %599 }
0x1296   :  { %v602_v37 = vmul.f32 %v600_v36, %v582_v29  ;;  %v909_v29 = vld [vmem:[%s1389_s9] ss:$0 sm:$0xff] }
0x1298   :  { %v603_v38 = vpack.c.bf16 %v602_v37, %v602_v37 }
0x129a   :  { %v605_v39 = vrot.slane %v603_v38, 2 }
0x129c   :  { %606 = vrot.lane.b32.xlu1 %v605_v39, %s1112_s2 }
0x130e   :  { %v607_v40 = vpop.permute.xlu1 %606 }
0x130f   :  { %1003 = vmatmul.mubr.msk.bf16.vlgmr.msra.gmra.mrb[12].mxu1 %vm153_vm3, %v607_v40 }
0x1310   :  { %1025 = vmatprep.mubr.msk.f32.mxu1 %vm1109_vm1, %v1108_v1  ;;  %v683_v1 = vld [vmem:[%s1386_s6] sm:$0xff] }
0x13e2   :  { %v645_v41 = vpop.f32.mrb[12].mxu1 }
0x13e3   :  { %v652_v42 = vrot.slane %v645_v41, 2  ;;  %v1004_v43 = vpop.f32.mrb[13].mxu1 }
0x13e4   :  { %v648_v44 = vpop.f32.mrb[14].mxu1 }
0x13e5   :  { %v654_v45 = vadd.f32 %v652_v42, %v1202_v11  ;;  %v1005_v46 = vpop.f32.mrb[15].mxu1  ;;  %v684_v11 = vld [vmem:[%s1386_s6 + $0x8] sm:$0xff] }
0x13e6   :  { %v1035_v54 = vpack.c.bf16 %v684_v11, %v683_v1 }
0x13e7   :  { %v655_v47 = vmul.f32 %v1196_v5, %v654_v45 }
0x13e8   :  { %1036 = vmatpush3.bf16.msra.mxu1 %v1035_v54 }
0x13e9   :  { %1078 = vtanh.f32 %v655_v47  ;;  %1037 = vmatprep.subr.bf16.mxu1 %v1113_v53 }
0x13ec   :  { %1039 = vmatpush3.bf16.msra.mxu1 %v1038_v58 }
0x13f3   :  { %v1079_v48 = vpop.eup %1078 }
0x13f4   :  { %v657_v49 = vmul.f32 %v1079_v48, %v1196_v5  ;;  %v660_v5 = vrot.slane %v596_v34, 6 }
0x13f6   :  { %v658_v50 = vadd.f32 %v1207_v14, %v657_v49 }
0x13f8   :  { %664 = vrot.lane.b32.xlu0 %v658_v50, %s1110_s4  ;;  %v662_v14 = vmul.f32 %v660_v5, %v658_v50 }
0x146a   :  { %v665_v51 = vpop.permute.xlu0 %664 }
0x146b   :  { %v667_v52 = vmul.f32 %v665_v51, %v658_v50 }
0x146d   :  { %669 = vrot.lane.b32.xlu1 %v667_v52, %s1112_s2 }
0x14df   :  { %v670_v57 = vpop.permute.xlu1 %669 }
0x14e0   :  { %v672_v59 = vadd.f32 %v670_v57, %v662_v14 }
0x14e2   :  { %1080 = vtanh.f32 %v672_v59 }
0x14ec   :  { %v1081_v3 = vpop.eup %1080 }
0x14ed   :  { %675 = vrot.lane.b32.xlu0 %v1081_v3, %s1110_s4 }
0x14f1   :  { %768 = vrot.lane.b32.xlu0 %v680_v20, %s1112_s2 }
0x155f   :  { %v676_v4 = vpop.permute.xlu0 %675 }
0x1560   :  { %v678_v6 = vmul.f32 %v676_v4, %v658_v50 }
0x1562   :  { %v681_v8 = vmax.f32 %v678_v6, 0.0 }
0x1563   :  { %v769_v9 = vpop.permute.xlu0 %768 }
0x1564   :  { %v682_v10 = vmin.f32 %v681_v8, 6.0  ;;  %1026 = vmatmul.mubr.msk.f32.vlgmr.msra.gmra.mrb[16].mxu1 %vm153_vm3, %v769_v9 }
0x1566   :  { %v692_v12 = vrot.slane %v682_v10, 6 }
0x1568   :  { %693 = vrot.lane.b32.xlu1 %v692_v12, %s1112_s2 }
0x15da   :  { %v694_v24 = vpop.permute.xlu1 %693 }
0x15db   :  { %1015 = vmatmul.mubr.msk.f32.vlgmr.msra.gmra.mrb[16].mxu0 %vm153_vm3, %v694_v24 }
0x1637   :  { %v838_v13 = vpop.f32.mrb[16].mxu1 }
0x1638   :  { %v1027_v15 = vpop.f32.mrb[17].mxu1 }
0x16ae   :  { %v763_v16 = vpop.f32.mrb[16].mxu0 }
0x16af   :  { %v839_v18 = vadd.f32 %v838_v13, %v763_v16  ;;  %v1016_v21 = vpop.f32.mrb[17].mxu0 }
0x16b1   :  { %v849_v22 = vadd.f32 %v907_v17, %v839_v18 }
0x16b3   :  { %v851_v23 = vmul.f32 1.442695, %v849_v22  ;;  %vm850_vm4 = vcmp.gt.f32.partialorder %v849_v22, 0.0 }
0x16b5   :  { %1082 = vpow2.f32 %v851_v23 }
0x16bf   :  { %v1083_v25 = vpop.eup %1082 }
0x16c0   :  { %v908_v26 = vadd.f32 -1.0, %v1083_v25 }
0x16c2   :  { %v854_v27 = vmul.f32 1.6732632, %v908_v26 }
0x16c4   :  { %v855_v28 = vsel %vm850_vm4, %v849_v22, %v854_v27 }
0x16c5   :  { %v856_v30 = vmul.f32 1.050701, %v855_v28 }
0x16c7   :  { %v864_v7 = vadd.f32 %v909_v29, %v856_v30 }
0x16c9   :  { %v866_v32 = vsub.f32 %v864_v7, %v849_v22 }
0x16cb   :  { %v873_v33 = vmul.f32 %v910_v31, %v866_v32 }
0x16cd   :  { %v874_v34 = vadd.f32 %v873_v33, %v849_v22 }
0x16cf   :  { %876 = vst.msk [vmem:[#allocation2] sm:$0x3] %vm875_vm5, %v874_v34 }
0x16d0   :  { %1095 = shalt.err (!%p1092_p4)
}
0x16d1   :  { %s1096_s27 = scalar_lea.hbm %s1391_s11, 32 }
0x16d2   :  { %p1097_p5 = scmp.ne.s32.totalorder %s1391_s11, %s1096_s27  ;;  %p1100_p6 = scmp.lt.u32.totalorder %s1096_s27, %s1391_s11 }
0x16d4   :  { %p1102_p7 = pnand %p1100_p6, %p1097_p5 }
0x16d6   :  { %1105 = shalt.err (!%p1102_p7)
}
0x16d7   :  { %886 = dma.vmem_to_hbm [thread:$0]  %s884_s25, 32, %s1391_s11, [#allocation3]  }
0x16d8   :  { %1106 = dma.done.wait [#allocation3], 32  }
0x16d9   :  { %1107 = vsyncadd [#allocation3], 4294967264 }
0x16da   :  { %890 = vsyncpa [#allocation3], 1 }

</bundles_post_ra>
